<compile_context>
chip_gen: v7x
topology: tpu7x:2x2x1
jax: 0.10.0
libtpu: 0.0.40
codegen_flags: <defaults>
</compile_context>

<pallas_src>
import jax
import jax.numpy as jnp
from jax import lax
from jax.experimental import pallas as pl
from jax.experimental.pallas import tpu as pltpu


# Below this batch size the whole call is launch overhead; stay in fused XLA.
# (Pick the exact crossover from xprof-min timings; HBM traffic only starts
# to dominate the fixed pallas_call cost at tens of thousands of rows.)
_SMALL_BATCH_THRESHOLD = 32768

_LANE = 128  # TPU lane width: batch tiles must be a multiple of this (or == B).


def _linear_kernel(xT_ref, w_ref, b_ref, oT_ref):
    """One batch tile of yT = W @ xT + b (lane-dense layout).

    xT_ref: (in_f, tb)   w_ref: (out_f, in_f)   b_ref: (out_f, 1)
    oT_ref: (out_f, tb)

    Contracts W dim 1 with xT dim 0 so the kernel body is a single MXU dot;
    the op is HBM-bound, the MXU push is negligible filler.
    """
    acc = lax.dot_general(
        w_ref[...], xT_ref[...],
        dimension_numbers=(((1,), (0,)), ((), ())),
        preferred_element_type=jnp.float32)          # (out_f, tb)
    oT_ref[...] = (acc + b_ref[...]).astype(oT_ref.dtype)


def _choose_tile(B, block_rows):
    """Pick a lane-aligned batch tile.

    - tb must be a multiple of 128 (lane width) unless it equals B.
    - keep at least 2 grid steps when B is large enough so that on v7x the
      'parallel' batch axis gives both TensorCores work.
    """
    if B <= 2 * _LANE:
        return B                                   # single full-extent block
    tb = min(block_rows, pl.cdiv(B, 2))            # >= 2 grid steps
    tb = max(_LANE, (tb // _LANE) * _LANE)         # lane-aligned
    return tb


def _pallas_linear_batched(x, weight, bias, block_rows):
    """Pallas path: y = x @ W.T + b, computed lane-dense as yT = W @ xT + b."""
    B, in_f = x.shape
    out_f = weight.shape[0]

    tb = _choose_tile(B, block_rows)
    grid = (pl.cdiv(B, tb),)       # partial final block handled/masked by Pallas

    xT = x.T                        # (in_f, B): batch on the 128-lane axis
    b2d = bias.reshape(out_f, 1)    # column bias for the transposed output

    cost = pl.CostEstimate(
        flops=2 * B * in_f * out_f,
        transcendentals=0,
        bytes_accessed=(B * in_f + out_f * in_f + out_f + B * out_f)
        * x.dtype.itemsize)

    yT = pl.pallas_call(
        _linear_kernel,
        out_shape=jax.ShapeDtypeStruct((out_f, B), x.dtype),
        grid=grid,
        in_specs=[
            # Batch tiled over the grid; the feature dim (second-to-last) is
            # full-extent, so (8,128) divisibility holds via "equals full
            # dim"; tb is a multiple of 128 (or == B).
            pl.BlockSpec((in_f, tb), lambda i: (0, i)),
            # Weight / bias are grid-invariant (stay resident in VMEM).
            pl.BlockSpec((out_f, in_f), lambda i: (0, 0)),
            pl.BlockSpec((out_f, 1), lambda i: (0, 0)),
        ],
        out_specs=pl.BlockSpec((out_f, tb), lambda i: (0, i)),
        compiler_params=pltpu.CompilerParams(
            dimension_semantics=("parallel",)),    # v7x: batch over 2 TCs
        cost_estimate=cost,
    )(xT, weight, b2d)

    return yT.T                     # one XLA transpose back to (B, out_f)


def linear_forward(x, weight, bias, *, block_rows=8192, force_pallas=False):
    """y = x @ weight.T + bias, matching nn.Linear(10, 2).

    x      : (10,) or (B, 10) float32
    weight : (2, 10)          float32
    bias   : (2,)             float32
    """
    squeeze = x.ndim == 1
    x2 = x[None, :] if squeeze else x
    B = x2.shape[0]

    if not force_pallas and B < _SMALL_BATCH_THRESHOLD:
        # Tiny input: the whole call is launch overhead — stay in fused XLA.
        out = x2 @ weight.T + bias
    else:
        out = _pallas_linear_batched(x2, weight, bias, block_rows)

    return out[0] if squeeze else out


if __name__ == "__main__":
    key = jax.random.PRNGKey(0)
    k_x, k_xb, k_xr, k_w, k_b = jax.random.split(key, 5)

    # Parameters (shapes from nn.Linear(10, 2)).
    weight = jax.random.normal(k_w, (2, 10), dtype=jnp.float32) * 0.1
    bias = jax.random.normal(k_b, (2,), dtype=jnp.float32) * 0.1

    # 1) Original example input: 1-D tensor of shape (10,).
    x1d = jax.random.normal(k_x, (10,), dtype=jnp.float32)
    y_small = linear_forward(x1d, weight, bias)                 # fused-XLA path
    y_small_pl = linear_forward(x1d, weight, bias,
                                force_pallas=True)              # Pallas, 1 block
    jax.block_until_ready((y_small, y_small_pl))

    y_small_ref = x1d @ weight.T + bias
    assert y_small.shape == (2,)
    assert jnp.allclose(y_small, y_small_ref, atol=1e-5, rtol=1e-5)
    assert jnp.allclose(y_small_pl, y_small_ref, atol=1e-5, rtol=1e-5)

    # 2) Lane-aligned batch: 2 full 512-wide grid steps through the Pallas path.
    xb = jax.random.normal(k_xb, (1024, 10), dtype=jnp.float32)
    yb = linear_forward(xb, weight, bias, block_rows=512, force_pallas=True)
    jax.block_until_ready(yb)
    yb_ref = xb @ weight.T + bias
    assert yb.shape == (1024, 2)
    assert jnp.allclose(yb, yb_ref, atol=1e-5, rtol=1e-5)

    # 3) Ragged batch (not a multiple of the 128-wide tile): exercises the
    #    Pallas-masked partial final block (no jnp.pad / output slice).
    xr = jax.random.normal(k_xr, (1000, 10), dtype=jnp.float32)
    yr = linear_forward(xr, weight, bias, force_pallas=True)
    jax.block_until_ready(yr)
    yr_ref = xr @ weight.T + bias
    assert yr.shape == (1000, 2)
    assert jnp.allclose(yr, yr_ref, atol=1e-5, rtol=1e-5)

    print("KERNEL_OK")
</pallas_src>

<mosaic_0001>
module attributes {stable_mosaic.version = 11 : i64} {
  func.func @_linear_kernel(%arg0: i32, %arg1: memref<10x1xf32, #tpu.memory_space<vmem>>, %arg2: memref<2x10xf32, #tpu.memory_space<vmem>>, %arg3: memref<2x1xf32, #tpu.memory_space<vmem>>, %arg4: memref<2x1xf32, #tpu.memory_space<vmem>>) attributes {dimension_semantics = [#tpu.dimension_semantics<parallel>], iteration_bounds = array<i64: 1>, scalar_prefetch = 0 : i64, scratch_operands = 0 : i64, tpu.core_type = #tpu.core_type<tc>, window_params = [{transform_indices = @transform_0, window_bounds = array<i64: 10, 1>}, {pipeline_mode = #tpu.pipeline_mode<synchronous>, transform_indices = @transform_1, window_bounds = array<i64: 2, 10>}, {pipeline_mode = #tpu.pipeline_mode<synchronous>, transform_indices = @transform_2, window_bounds = array<i64: 2, 1>}, {transform_indices = @transform_3, window_bounds = array<i64: 2, 1>}]} {
    %c0 = arith.constant 0 : index
    %c0_0 = arith.constant 0 : index
    %0 = vector.load %arg2[%c0, %c0_0] : memref<2x10xf32, #tpu.memory_space<vmem>>, vector<2x10xf32>
    %c0_1 = arith.constant 0 : index
    %c0_2 = arith.constant 0 : index
    %1 = vector.load %arg1[%c0_1, %c0_2] : memref<10x1xf32, #tpu.memory_space<vmem>>, vector<10x1xf32>
    %cst = arith.constant dense<0.000000e+00> : vector<2x1xf32>
    %2 = tpu.matmul %0, %1, %cst {dimension_numbers = #tpu.dot_dimension_numbers<[1], [0], [0], [1], [0, 0, 1, 1], [], []>} : vector<2x10xf32>, vector<10x1xf32>, vector<2x1xf32> -> vector<2x1xf32>
    %c0_3 = arith.constant 0 : index
    %c0_4 = arith.constant 0 : index
    %3 = vector.load %arg3[%c0_3, %c0_4] : memref<2x1xf32, #tpu.memory_space<vmem>>, vector<2x1xf32>
    %4 = arith.addf %2, %3 : vector<2x1xf32>
    %c0_5 = arith.constant 0 : index
    %c0_6 = arith.constant 0 : index
    %5 = vector.load %arg4[%c0_5, %c0_6] : memref<2x1xf32, #tpu.memory_space<vmem>>, vector<2x1xf32>
    tpu.vector_store %arg4[%c0_5, %c0_6], %4 {strides = array<i32>} : memref<2x1xf32, #tpu.memory_space<vmem>>, vector<2x1xf32>,
    return
  }
  func.func @transform_0(%arg0: i32) -> (i32, i32) {
    %c0_i32 = arith.constant 0 : i32
    %c0_i32_0 = arith.constant 0 : i32
    return %c0_i32, %arg0 : i32, i32
  }
  func.func @transform_1(%arg0: i32) -> (i32, i32) {
    %c0_i32 = arith.constant 0 : i32
    %c0_i32_0 = arith.constant 0 : i32
    %c0_i32_1 = arith.constant 0 : i32
    return %c0_i32, %c0_i32_0 : i32, i32
  }
  func.func @transform_2(%arg0: i32) -> (i32, i32) {
    %c0_i32 = arith.constant 0 : i32
    %c0_i32_0 = arith.constant 0 : i32
    %c0_i32_1 = arith.constant 0 : i32
    return %c0_i32, %c0_i32_0 : i32, i32
  }
  func.func @transform_3(%arg0: i32) -> (i32, i32) {
    %c0_i32 = arith.constant 0 : i32
    %c0_i32_0 = arith.constant 0 : i32
    return %c0_i32, %arg0 : i32, i32
  }
}

</mosaic_0001>

<bundles_post_ra>
// kernel: tpu_custom_call.1
= control target key start
LH: loop header
LB: loop body
LE: loop exit
PB: predicated region body
PF: predicated region fallthrough
CT: control target
= control target key end

     0   :  { %vm22_vm0 = vcmask 1041408   ;;  %v122_v0 = vmov 0.0|0.0   ;;  %vm123_vm1 = vmmov 1   ;;  %vm124_vm3 = vmmov 0   ;;  %s161_s0 = inlined_call_operand.vmem [shape: f32[10,1], index: 0, kind: input, shape index: {}]   ;;  %s162_s1 = inlined_call_operand.vmem [shape: f32[2,10], index: 1, kind: input, shape index: {}]   ;;  %s163_s2 = inlined_call_operand.vmem [shape: f32[2,1], index: 2, kind: input, shape index: {}]   ;;  %s164_s3 = inlined_call_operand.vmem [shape: f32[2,1], index: 3, kind: output, shape index: {}]  }
   0x1   :  { %114 = vmatprep.subr.bf16.mxu0 %v122_v0  ;;  %v15_v1 = vld [vmem:[%s161_s0] sm:$0xff]  ;;  %v16_v2 = vld [vmem:[%s161_s0 + $0x8] sm:$0x3]  ;;  %vm116_vm2 = vmpackc.low %vm22_vm0, %vm123_vm1  ;;  %v125_v4 = vmov 0.0   ;;  %vm18_vm4 = vcmask 80896   ;;  %vm96_vm5 = vcmask 1024  }
   0x2   :  { %v115_v3 = vpack.c.bf16 %v16_v2, %v15_v1  ;;  %111 = vmatprep.mubr.msk.f32.mxu0 %vm124_vm3, %v125_v4  ;;  %v14_v5 = vld [vmem:[%s162_s1] sm:$0x3] }
   0x3   :  { %v17_v6 = vld [vmem:[%s163_s2] sm:$0x3] }
   0x4   :  { %117 = vmatpush3.bf16.msk.msra.mxu0 %vm116_vm2, %v115_v3 }
   0x7   :  { %112 = vmatmul.mubr.msk.f32.vlgmr.msra.gmra.mrb[0].mxu0 %vm18_vm4, %v14_v5 }
  0xda   :  { %v92_v7 = vpop.f32.mrb[0].mxu0 }
  0xdb   :  { %v93_v8 = vadd.f32 %v92_v7, %v17_v6  ;;  %v113_v9 = vpop.f32.mrb[1].mxu0 }
  0xdd   :  { %97 = vst.msk [vmem:[%s164_s3] sm:$0x3] %vm96_vm5, %v93_v8 }

</bundles_post_ra>
